<compile_context>
chip_gen: v5e
topology: v5e:2x2
jax: 0.10.0
libtpu: 0.0.40
codegen_flags: <defaults>
</compile_context>

<pallas_src>
import functools

import jax
import jax.numpy as jnp
from jax.experimental import pallas as pl
from jax.experimental.pallas import tpu as pltpu

SIZE = 28
LATENT = 16
FACTORS = [2, 4, 8]
# feature dims along the chain of 8 linears in the PyTorch module
DIMS = [
    SIZE * SIZE,            # 784
    LATENT * FACTORS[2],    # 128
    LATENT * FACTORS[1],    # 64
    LATENT * FACTORS[0],    # 32
    LATENT,                 # 16
    LATENT * FACTORS[0],    # 32
    LATENT * FACTORS[1],    # 64
    LATENT * FACTORS[2],    # 128
    SIZE * SIZE,            # 784
]
N_LAYERS = 8                 # linears in the PyTorch module
N_FUSED = 7                  # after pre-composing the 32->16->32 pair
IN_DIM = SIZE * SIZE         # 784
OUT_DIM = SIZE * SIZE        # 784
ROW_TILE_MAX = 512           # rows per grid step for large batches


def _round_up(a, b):
    return -(-a // b) * b


def _gelu_tanh(v):
    c = jnp.asarray(0.7978845608028654, v.dtype)  # sqrt(2/pi)
    return 0.5 * v * (1.0 + jnp.tanh(c * (v + 0.044715 * v * v * v)))


def _mlp_ae_kernel(x_ref, *refs):
    # refs = (w0, b0, ..., w6, b6, o_ref)
    # weights: bf16 (in, out); biases: f32 (1, out); x: f32 (row_tile, 784)
    o_ref = refs[-1]
    param_refs = refs[:-1]

    # f32 tile straight from HBM; cast to bf16 for the MXU (hidden under DMA).
    h = x_ref[...].astype(jnp.bfloat16)
    for layer in range(N_FUSED):
        w = param_refs[2 * layer][...]
        b = param_refs[2 * layer + 1][...]            # (1, out) broadcasts over rows
        acc = jnp.dot(h, w, preferred_element_type=jnp.float32) + b
        if layer == N_FUSED - 1:
            # final Tanh in f32, store bf16 (halves output HBM writes)
            o_ref[...] = jnp.tanh(acc).astype(o_ref.dtype)
        else:
            h = _gelu_tanh(acc).astype(jnp.bfloat16)  # GELU in f32, back to bf16 for MXU


def _prepare_params(params):
    """Fuse the activation-free 32->16->32 pair and cast weights to bf16
    (biases stay f32)."""
    assert len(params) == N_LAYERS
    w4, b4 = params[3]        # 32 -> 16 (encoder tail, no activation after)
    w5, b5 = params[4]        # 16 -> 32 (decoder head)
    w45 = w4 @ w5             # (32, 32)
    b45 = b4 @ w5 + b5        # (1, 32)
    fused = list(params[:3]) + [(w45, b45)] + list(params[5:])

    flat = []
    for w, b in fused:
        flat.append(w.astype(jnp.bfloat16))
        flat.append(b.astype(jnp.float32))
    return flat


def _row_tiling(m):
    """Pick (row_tile, padded_rows).  Small batches: single minimally padded
    tile (16-row aligned).  Large batches: tiles <= ROW_TILE_MAX with at least
    two grid steps so the 'parallel' axis can shard across v7x's 2 TCs."""
    if m <= 256:
        tile = max(16, _round_up(m, 16))
        return tile, tile
    steps = max(2, -(-m // ROW_TILE_MAX))
    tile = _round_up(-(-m // steps), 16)
    return tile, tile * steps


@functools.partial(jax.jit, static_argnames=("size", "out_dtype"))
def mlp_autoencoder_forward(x, params, size=SIZE, out_dtype=jnp.float32):
    """x: (B, C, size, size) float32; params: list of 8 (W_in_out, b_1_out) pairs."""
    B, C, H, W = x.shape
    assert H == size and W == size
    M = B * C
    x2d = x.reshape(M, H * W)                     # keep f32; kernel casts to bf16

    row_tile, Mp = _row_tiling(M)
    if Mp != M:
        x2d = jnp.pad(x2d, ((0, Mp - M), (0, 0)))

    flat_params = _prepare_params(params)

    grid = (Mp // row_tile,)
    x_spec = pl.BlockSpec((row_tile, IN_DIM), lambda i: (i, 0))
    # Params are VMEM-resident across the row-tile axis (constant block index).
    # They total <0.5 MiB, so default (double) buffering costs negligible VMEM.
    param_specs = [pl.BlockSpec(p.shape, lambda i: (0, 0)) for p in flat_params]
    out_spec = pl.BlockSpec((row_tile, OUT_DIM), lambda i: (i, 0))

    out2d = pl.pallas_call(
        _mlp_ae_kernel,
        out_shape=jax.ShapeDtypeStruct((Mp, OUT_DIM), jnp.bfloat16),
        grid_spec=pltpu.PrefetchScalarGridSpec(
            num_scalar_prefetch=0,
            grid=grid,
            in_specs=[x_spec] + param_specs,
            out_specs=out_spec,
        ),
        compiler_params=pltpu.CompilerParams(
            dimension_semantics=("parallel",),
            vmem_limit_bytes=32 << 20,
        ),
    )(x2d, *flat_params)

    # Row un-pad + dtype cast fuse into one (cheap) pass; with out_dtype=bf16
    # and M already tile-aligned this is a free view.
    out2d = out2d[:M].astype(out_dtype)
    return out2d.reshape(B, C, size, size)


def init_params(key):
    """Deterministic parameter init; shapes follow the PyTorch module.

    PyTorch Linear stores weight (out, in) and computes y = x @ W.T + b.
    We store W already transposed as (in, out); bias as (1, out).
    """
    params = []
    for layer in range(N_LAYERS):
        fan_in, fan_out = DIMS[layer], DIMS[layer + 1]
        key, kw, kb = jax.random.split(key, 3)
        bound = 1.0 / jnp.sqrt(fan_in)
        w = jax.random.uniform(kw, (fan_in, fan_out), jnp.float32, -bound, bound)
        b = jax.random.uniform(kb, (1, fan_out), jnp.float32, -bound, bound)
        params.append((w, b))
    return params


def reference_forward(x, params, size=SIZE):
    """Plain-JAX f32 reference with the original (unfused) 8-linear chain."""
    B, C, H, W = x.shape
    h = x.reshape(B * C, H * W)
    for layer, (w, b) in enumerate(params):
        h = h @ w + b
        if layer == 3:
            pass                       # latent: no activation
        elif layer == N_LAYERS - 1:
            h = jnp.tanh(h)
        else:
            h = _gelu_tanh(h)
    return h.reshape(B, C, size, size)


if __name__ == "__main__":
    key = jax.random.PRNGKey(0)
    key, kx = jax.random.split(key)

    B, C = 2, 4
    x = jax.random.normal(kx, (B, C, SIZE, SIZE), jnp.float32)
    params = init_params(key)

    out = mlp_autoencoder_forward(x, params)
    out = jax.block_until_ready(out)

    assert out.shape == (B, C, SIZE, SIZE), out.shape
    assert out.dtype == jnp.float32, out.dtype

    ref = reference_forward(x, params)
    # bf16 weights/activations/output (f32 accumulation) => relaxed tolerance
    assert jnp.allclose(out, ref, rtol=5e-2, atol=5e-2), (
        float(jnp.max(jnp.abs(out - ref)))
    )

    print("KERNEL_OK")
</pallas_src>

<mosaic_0001>
module attributes {stable_mosaic.version = 11 : i64} {
  func.func @_mlp_ae_kernel(%arg0: i32, %arg1: memref<16x784xf32, #tpu.memory_space<vmem>>, %arg2: memref<784x128xbf16, #tpu.memory_space<vmem>>, %arg3: memref<1x128xf32, #tpu.memory_space<vmem>>, %arg4: memref<128x64xbf16, #tpu.memory_space<vmem>>, %arg5: memref<1x64xf32, #tpu.memory_space<vmem>>, %arg6: memref<64x32xbf16, #tpu.memory_space<vmem>>, %arg7: memref<1x32xf32, #tpu.memory_space<vmem>>, %arg8: memref<32x32xbf16, #tpu.memory_space<vmem>>, %arg9: memref<1x32xf32, #tpu.memory_space<vmem>>, %arg10: memref<32x64xbf16, #tpu.memory_space<vmem>>, %arg11: memref<1x64xf32, #tpu.memory_space<vmem>>, %arg12: memref<64x128xbf16, #tpu.memory_space<vmem>>, %arg13: memref<1x128xf32, #tpu.memory_space<vmem>>, %arg14: memref<128x784xbf16, #tpu.memory_space<vmem>>, %arg15: memref<1x784xf32, #tpu.memory_space<vmem>>, %arg16: memref<16x784xbf16, #tpu.memory_space<vmem>>) attributes {dimension_semantics = [#tpu.dimension_semantics<parallel>], iteration_bounds = array<i64: 1>, scalar_prefetch = 0 : i64, scratch_operands = 0 : i64, tpu.core_type = #tpu.core_type<tc>, window_params = [{transform_indices = @transform_0, window_bounds = array<i64: 16, 784>}, {pipeline_mode = #tpu.pipeline_mode<synchronous>, transform_indices = @transform_1, window_bounds = array<i64: 784, 128>}, {pipeline_mode = #tpu.pipeline_mode<synchronous>, transform_indices = @transform_2, window_bounds = array<i64: 1, 128>}, {pipeline_mode = #tpu.pipeline_mode<synchronous>, transform_indices = @transform_3, window_bounds = array<i64: 128, 64>}, {pipeline_mode = #tpu.pipeline_mode<synchronous>, transform_indices = @transform_4, window_bounds = array<i64: 1, 64>}, {pipeline_mode = #tpu.pipeline_mode<synchronous>, transform_indices = @transform_5, window_bounds = array<i64: 64, 32>}, {pipeline_mode = #tpu.pipeline_mode<synchronous>, transform_indices = @transform_6, window_bounds = array<i64: 1, 32>}, {pipeline_mode = #tpu.pipeline_mode<synchronous>, transform_indices = @transform_7, window_bounds = array<i64: 32, 32>}, {pipeline_mode = #tpu.pipeline_mode<synchronous>, transform_indices = @transform_8, window_bounds = array<i64: 1, 32>}, {pipeline_mode = #tpu.pipeline_mode<synchronous>, transform_indices = @transform_9, window_bounds = array<i64: 32, 64>}, {pipeline_mode = #tpu.pipeline_mode<synchronous>, transform_indices = @transform_10, window_bounds = array<i64: 1, 64>}, {pipeline_mode = #tpu.pipeline_mode<synchronous>, transform_indices = @transform_11, window_bounds = array<i64: 64, 128>}, {pipeline_mode = #tpu.pipeline_mode<synchronous>, transform_indices = @transform_12, window_bounds = array<i64: 1, 128>}, {pipeline_mode = #tpu.pipeline_mode<synchronous>, transform_indices = @transform_13, window_bounds = array<i64: 128, 784>}, {pipeline_mode = #tpu.pipeline_mode<synchronous>, transform_indices = @transform_14, window_bounds = array<i64: 1, 784>}, {transform_indices = @transform_15, window_bounds = array<i64: 16, 784>}]} {
    %c0 = arith.constant 0 : index
    %c0_0 = arith.constant 0 : index
    %0 = vector.load %arg1[%c0, %c0_0] : memref<16x784xf32, #tpu.memory_space<vmem>>, vector<16x784xf32>
    %1 = arith.truncf %0 : vector<16x784xf32> to vector<16x784xbf16>
    %c0_1 = arith.constant 0 : index
    %c0_2 = arith.constant 0 : index
    %2 = vector.load %arg2[%c0_1, %c0_2] : memref<784x128xbf16, #tpu.memory_space<vmem>>, vector<784x128xbf16>
    %c0_3 = arith.constant 0 : index
    %c0_4 = arith.constant 0 : index
    %3 = vector.load %arg3[%c0_3, %c0_4] : memref<1x128xf32, #tpu.memory_space<vmem>>, vector<1x128xf32>
    %cst = arith.constant dense<0.000000e+00> : vector<16x128xf32>
    %4 = tpu.matmul %1, %2, %cst {dimension_numbers = #tpu.dot_dimension_numbers<[1], [0], [0], [1], [0, 0, 1, 1], [], []>} : vector<16x784xbf16>, vector<784x128xbf16>, vector<16x128xf32> -> vector<16x128xf32>
    %5 = vector.broadcast %3 : vector<1x128xf32> to vector<16x128xf32>
    %6 = arith.addf %4, %5 : vector<16x128xf32>
    %cst_5 = arith.constant 5.000000e-01 : f32
    %7 = vector.broadcast %cst_5 : f32 to vector<16x128xf32>
    %8 = arith.mulf %7, %6 : vector<16x128xf32>
    %cst_6 = arith.constant 4.471500e-02 : f32
    %9 = vector.broadcast %cst_6 : f32 to vector<16x128xf32>
    %10 = arith.mulf %9, %6 : vector<16x128xf32>
    %11 = arith.mulf %10, %6 : vector<16x128xf32>
    %12 = arith.mulf %11, %6 : vector<16x128xf32>
    %13 = arith.addf %6, %12 : vector<16x128xf32>
    %cst_7 = arith.constant 0.797884583 : f32
    %14 = vector.broadcast %cst_7 : f32 to vector<16x128xf32>
    %15 = arith.mulf %14, %13 : vector<16x128xf32>
    %16 = math.tanh %15 : vector<16x128xf32>
    %cst_8 = arith.constant 1.000000e+00 : f32
    %17 = vector.broadcast %cst_8 : f32 to vector<16x128xf32>
    %18 = arith.addf %17, %16 : vector<16x128xf32>
    %19 = arith.mulf %8, %18 : vector<16x128xf32>
    %20 = arith.truncf %19 : vector<16x128xf32> to vector<16x128xbf16>
    %c0_9 = arith.constant 0 : index
    %c0_10 = arith.constant 0 : index
    %21 = vector.load %arg4[%c0_9, %c0_10] : memref<128x64xbf16, #tpu.memory_space<vmem>>, vector<128x64xbf16>
    %c0_11 = arith.constant 0 : index
    %c0_12 = arith.constant 0 : index
    %22 = vector.load %arg5[%c0_11, %c0_12] : memref<1x64xf32, #tpu.memory_space<vmem>>, vector<1x64xf32>
    %cst_13 = arith.constant dense<0.000000e+00> : vector<16x64xf32>
    %23 = tpu.matmul %20, %21, %cst_13 {dimension_numbers = #tpu.dot_dimension_numbers<[1], [0], [0], [1], [0, 0, 1, 1], [], []>} : vector<16x128xbf16>, vector<128x64xbf16>, vector<16x64xf32> -> vector<16x64xf32>
    %24 = vector.broadcast %22 : vector<1x64xf32> to vector<16x64xf32>
    %25 = arith.addf %23, %24 : vector<16x64xf32>
    %cst_14 = arith.constant 5.000000e-01 : f32
    %26 = vector.broadcast %cst_14 : f32 to vector<16x64xf32>
    %27 = arith.mulf %26, %25 : vector<16x64xf32>
    %cst_15 = arith.constant 4.471500e-02 : f32
    %28 = vector.broadcast %cst_15 : f32 to vector<16x64xf32>
    %29 = arith.mulf %28, %25 : vector<16x64xf32>
    %30 = arith.mulf %29, %25 : vector<16x64xf32>
    %31 = arith.mulf %30, %25 : vector<16x64xf32>
    %32 = arith.addf %25, %31 : vector<16x64xf32>
    %cst_16 = arith.constant 0.797884583 : f32
    %33 = vector.broadcast %cst_16 : f32 to vector<16x64xf32>
    %34 = arith.mulf %33, %32 : vector<16x64xf32>
    %35 = math.tanh %34 : vector<16x64xf32>
    %cst_17 = arith.constant 1.000000e+00 : f32
    %36 = vector.broadcast %cst_17 : f32 to vector<16x64xf32>
    %37 = arith.addf %36, %35 : vector<16x64xf32>
    %38 = arith.mulf %27, %37 : vector<16x64xf32>
    %39 = arith.truncf %38 : vector<16x64xf32> to vector<16x64xbf16>
    %c0_18 = arith.constant 0 : index
    %c0_19 = arith.constant 0 : index
    %40 = vector.load %arg6[%c0_18, %c0_19] : memref<64x32xbf16, #tpu.memory_space<vmem>>, vector<64x32xbf16>
    %c0_20 = arith.constant 0 : index
    %c0_21 = arith.constant 0 : index
    %41 = vector.load %arg7[%c0_20, %c0_21] : memref<1x32xf32, #tpu.memory_space<vmem>>, vector<1x32xf32>
    %cst_22 = arith.constant dense<0.000000e+00> : vector<16x32xf32>
    %42 = tpu.matmul %39, %40, %cst_22 {dimension_numbers = #tpu.dot_dimension_numbers<[1], [0], [0], [1], [0, 0, 1, 1], [], []>} : vector<16x64xbf16>, vector<64x32xbf16>, vector<16x32xf32> -> vector<16x32xf32>
    %43 = vector.broadcast %41 : vector<1x32xf32> to vector<16x32xf32>
    %44 = arith.addf %42, %43 : vector<16x32xf32>
    %cst_23 = arith.constant 5.000000e-01 : f32
    %45 = vector.broadcast %cst_23 : f32 to vector<16x32xf32>
    %46 = arith.mulf %45, %44 : vector<16x32xf32>
    %cst_24 = arith.constant 4.471500e-02 : f32
    %47 = vector.broadcast %cst_24 : f32 to vector<16x32xf32>
    %48 = arith.mulf %47, %44 : vector<16x32xf32>
    %49 = arith.mulf %48, %44 : vector<16x32xf32>
    %50 = arith.mulf %49, %44 : vector<16x32xf32>
    %51 = arith.addf %44, %50 : vector<16x32xf32>
    %cst_25 = arith.constant 0.797884583 : f32
    %52 = vector.broadcast %cst_25 : f32 to vector<16x32xf32>
    %53 = arith.mulf %52, %51 : vector<16x32xf32>
    %54 = math.tanh %53 : vector<16x32xf32>
    %cst_26 = arith.constant 1.000000e+00 : f32
    %55 = vector.broadcast %cst_26 : f32 to vector<16x32xf32>
    %56 = arith.addf %55, %54 : vector<16x32xf32>
    %57 = arith.mulf %46, %56 : vector<16x32xf32>
    %58 = arith.truncf %57 : vector<16x32xf32> to vector<16x32xbf16>
    %c0_27 = arith.constant 0 : index
    %c0_28 = arith.constant 0 : index
    %59 = vector.load %arg8[%c0_27, %c0_28] : memref<32x32xbf16, #tpu.memory_space<vmem>>, vector<32x32xbf16>
    %c0_29 = arith.constant 0 : index
    %c0_30 = arith.constant 0 : index
    %60 = vector.load %arg9[%c0_29, %c0_30] : memref<1x32xf32, #tpu.memory_space<vmem>>, vector<1x32xf32>
    %cst_31 = arith.constant dense<0.000000e+00> : vector<16x32xf32>
    %61 = tpu.matmul %58, %59, %cst_31 {dimension_numbers = #tpu.dot_dimension_numbers<[1], [0], [0], [1], [0, 0, 1, 1], [], []>} : vector<16x32xbf16>, vector<32x32xbf16>, vector<16x32xf32> -> vector<16x32xf32>
    %62 = vector.broadcast %60 : vector<1x32xf32> to vector<16x32xf32>
    %63 = arith.addf %61, %62 : vector<16x32xf32>
    %cst_32 = arith.constant 5.000000e-01 : f32
    %64 = vector.broadcast %cst_32 : f32 to vector<16x32xf32>
    %65 = arith.mulf %64, %63 : vector<16x32xf32>
    %cst_33 = arith.constant 4.471500e-02 : f32
    %66 = vector.broadcast %cst_33 : f32 to vector<16x32xf32>
    %67 = arith.mulf %66, %63 : vector<16x32xf32>
    %68 = arith.mulf %67, %63 : vector<16x32xf32>
    %69 = arith.mulf %68, %63 : vector<16x32xf32>
    %70 = arith.addf %63, %69 : vector<16x32xf32>
    %cst_34 = arith.constant 0.797884583 : f32
    %71 = vector.broadcast %cst_34 : f32 to vector<16x32xf32>
    %72 = arith.mulf %71, %70 : vector<16x32xf32>
    %73 = math.tanh %72 : vector<16x32xf32>
    %cst_35 = arith.constant 1.000000e+00 : f32
    %74 = vector.broadcast %cst_35 : f32 to vector<16x32xf32>
    %75 = arith.addf %74, %73 : vector<16x32xf32>
    %76 = arith.mulf %65, %75 : vector<16x32xf32>
    %77 = arith.truncf %76 : vector<16x32xf32> to vector<16x32xbf16>
    %c0_36 = arith.constant 0 : index
    %c0_37 = arith.constant 0 : index
    %78 = vector.load %arg10[%c0_36, %c0_37] : memref<32x64xbf16, #tpu.memory_space<vmem>>, vector<32x64xbf16>
    %c0_38 = arith.constant 0 : index
    %c0_39 = arith.constant 0 : index
    %79 = vector.load %arg11[%c0_38, %c0_39] : memref<1x64xf32, #tpu.memory_space<vmem>>, vector<1x64xf32>
    %cst_40 = arith.constant dense<0.000000e+00> : vector<16x64xf32>
    %80 = tpu.matmul %77, %78, %cst_40 {dimension_numbers = #tpu.dot_dimension_numbers<[1], [0], [0], [1], [0, 0, 1, 1], [], []>} : vector<16x32xbf16>, vector<32x64xbf16>, vector<16x64xf32> -> vector<16x64xf32>
    %81 = vector.broadcast %79 : vector<1x64xf32> to vector<16x64xf32>
    %82 = arith.addf %80, %81 : vector<16x64xf32>
    %cst_41 = arith.constant 5.000000e-01 : f32
    %83 = vector.broadcast %cst_41 : f32 to vector<16x64xf32>
    %84 = arith.mulf %83, %82 : vector<16x64xf32>
    %cst_42 = arith.constant 4.471500e-02 : f32
    %85 = vector.broadcast %cst_42 : f32 to vector<16x64xf32>
    %86 = arith.mulf %85, %82 : vector<16x64xf32>
    %87 = arith.mulf %86, %82 : vector<16x64xf32>
    %88 = arith.mulf %87, %82 : vector<16x64xf32>
    %89 = arith.addf %82, %88 : vector<16x64xf32>
    %cst_43 = arith.constant 0.797884583 : f32
    %90 = vector.broadcast %cst_43 : f32 to vector<16x64xf32>
    %91 = arith.mulf %90, %89 : vector<16x64xf32>
    %92 = math.tanh %91 : vector<16x64xf32>
    %cst_44 = arith.constant 1.000000e+00 : f32
    %93 = vector.broadcast %cst_44 : f32 to vector<16x64xf32>
    %94 = arith.addf %93, %92 : vector<16x64xf32>
    %95 = arith.mulf %84, %94 : vector<16x64xf32>
    %96 = arith.truncf %95 : vector<16x64xf32> to vector<16x64xbf16>
    %c0_45 = arith.constant 0 : index
    %c0_46 = arith.constant 0 : index
    %97 = vector.load %arg12[%c0_45, %c0_46] : memref<64x128xbf16, #tpu.memory_space<vmem>>, vector<64x128xbf16>
    %c0_47 = arith.constant 0 : index
    %c0_48 = arith.constant 0 : index
    %98 = vector.load %arg13[%c0_47, %c0_48] : memref<1x128xf32, #tpu.memory_space<vmem>>, vector<1x128xf32>
    %cst_49 = arith.constant dense<0.000000e+00> : vector<16x128xf32>
    %99 = tpu.matmul %96, %97, %cst_49 {dimension_numbers = #tpu.dot_dimension_numbers<[1], [0], [0], [1], [0, 0, 1, 1], [], []>} : vector<16x64xbf16>, vector<64x128xbf16>, vector<16x128xf32> -> vector<16x128xf32>
    %100 = vector.broadcast %98 : vector<1x128xf32> to vector<16x128xf32>
    %101 = arith.addf %99, %100 : vector<16x128xf32>
    %cst_50 = arith.constant 5.000000e-01 : f32
    %102 = vector.broadcast %cst_50 : f32 to vector<16x128xf32>
    %103 = arith.mulf %102, %101 : vector<16x128xf32>
    %cst_51 = arith.constant 4.471500e-02 : f32
    %104 = vector.broadcast %cst_51 : f32 to vector<16x128xf32>
    %105 = arith.mulf %104, %101 : vector<16x128xf32>
    %106 = arith.mulf %105, %101 : vector<16x128xf32>
    %107 = arith.mulf %106, %101 : vector<16x128xf32>
    %108 = arith.addf %101, %107 : vector<16x128xf32>
    %cst_52 = arith.constant 0.797884583 : f32
    %109 = vector.broadcast %cst_52 : f32 to vector<16x128xf32>
    %110 = arith.mulf %109, %108 : vector<16x128xf32>
    %111 = math.tanh %110 : vector<16x128xf32>
    %cst_53 = arith.constant 1.000000e+00 : f32
    %112 = vector.broadcast %cst_53 : f32 to vector<16x128xf32>
    %113 = arith.addf %112, %111 : vector<16x128xf32>
    %114 = arith.mulf %103, %113 : vector<16x128xf32>
    %115 = arith.truncf %114 : vector<16x128xf32> to vector<16x128xbf16>
    %c0_54 = arith.constant 0 : index
    %c0_55 = arith.constant 0 : index
    %116 = vector.load %arg14[%c0_54, %c0_55] : memref<128x784xbf16, #tpu.memory_space<vmem>>, vector<128x784xbf16>
    %c0_56 = arith.constant 0 : index
    %c0_57 = arith.constant 0 : index
    %117 = vector.load %arg15[%c0_56, %c0_57] : memref<1x784xf32, #tpu.memory_space<vmem>>, vector<1x784xf32>
    %cst_58 = arith.constant dense<0.000000e+00> : vector<16x784xf32>
    %118 = tpu.matmul %115, %116, %cst_58 {dimension_numbers = #tpu.dot_dimension_numbers<[1], [0], [0], [1], [0, 0, 1, 1], [], []>} : vector<16x128xbf16>, vector<128x784xbf16>, vector<16x784xf32> -> vector<16x784xf32>
    %119 = vector.broadcast %117 : vector<1x784xf32> to vector<16x784xf32>
    %120 = arith.addf %118, %119 : vector<16x784xf32>
    %121 = math.tanh %120 : vector<16x784xf32>
    %122 = arith.truncf %121 : vector<16x784xf32> to vector<16x784xbf16>
    %c0_59 = arith.constant 0 : index
    %c0_60 = arith.constant 0 : index
    %123 = vector.load %arg16[%c0_59, %c0_60] : memref<16x784xbf16, #tpu.memory_space<vmem>>, vector<16x784xbf16>
    tpu.vector_store %arg16[%c0_59, %c0_60], %122 {strides = array<i32>} : memref<16x784xbf16, #tpu.memory_space<vmem>>, vector<16x784xbf16>,
    return
  }
  func.func @transform_0(%arg0: i32) -> (i32, i32) {
    %c0_i32 = arith.constant 0 : i32
    %c0_i32_0 = arith.constant 0 : i32
    return %arg0, %c0_i32 : i32, i32
  }
  func.func @transform_1(%arg0: i32) -> (i32, i32) {
    %c0_i32 = arith.constant 0 : i32
    %c0_i32_0 = arith.constant 0 : i32
    %c0_i32_1 = arith.constant 0 : i32
    return %c0_i32, %c0_i32_0 : i32, i32
  }
  func.func @transform_2(%arg0: i32) -> (i32, i32) {
    %c0_i32 = arith.constant 0 : i32
    %c0_i32_0 = arith.constant 0 : i32
    %c0_i32_1 = arith.constant 0 : i32
    return %c0_i32, %c0_i32_0 : i32, i32
  }
  func.func @transform_3(%arg0: i32) -> (i32, i32) {
    %c0_i32 = arith.constant 0 : i32
    %c0_i32_0 = arith.constant 0 : i32
    %c0_i32_1 = arith.constant 0 : i32
    return %c0_i32, %c0_i32_0 : i32, i32
  }
  func.func @transform_4(%arg0: i32) -> (i32, i32) {
    %c0_i32 = arith.constant 0 : i32
    %c0_i32_0 = arith.constant 0 : i32
    %c0_i32_1 = arith.constant 0 : i32
    return %c0_i32, %c0_i32_0 : i32, i32
  }
  func.func @transform_5(%arg0: i32) -> (i32, i32) {
    %c0_i32 = arith.constant 0 : i32
    %c0_i32_0 = arith.constant 0 : i32
    %c0_i32_1 = arith.constant 0 : i32
    return %c0_i32, %c0_i32_0 : i32, i32
  }
  func.func @transform_6(%arg0: i32) -> (i32, i32) {
    %c0_i32 = arith.constant 0 : i32
    %c0_i32_0 = arith.constant 0 : i32
    %c0_i32_1 = arith.constant 0 : i32
    return %c0_i32, %c0_i32_0 : i32, i32
  }
  func.func @transform_7(%arg0: i32) -> (i32, i32) {
    %c0_i32 = arith.constant 0 : i32
    %c0_i32_0 = arith.constant 0 : i32
    %c0_i32_1 = arith.constant 0 : i32
    return %c0_i32, %c0_i32_0 : i32, i32
  }
  func.func @transform_8(%arg0: i32) -> (i32, i32) {
    %c0_i32 = arith.constant 0 : i32
    %c0_i32_0 = arith.constant 0 : i32
    %c0_i32_1 = arith.constant 0 : i32
    return %c0_i32, %c0_i32_0 : i32, i32
  }
  func.func @transform_9(%arg0: i32) -> (i32, i32) {
    %c0_i32 = arith.constant 0 : i32
    %c0_i32_0 = arith.constant 0 : i32
    %c0_i32_1 = arith.constant 0 : i32
    return %c0_i32, %c0_i32_0 : i32, i32
  }
  func.func @transform_10(%arg0: i32) -> (i32, i32) {
    %c0_i32 = arith.constant 0 : i32
    %c0_i32_0 = arith.constant 0 : i32
    %c0_i32_1 = arith.constant 0 : i32
    return %c0_i32, %c0_i32_0 : i32, i32
  }
  func.func @transform_11(%arg0: i32) -> (i32, i32) {
    %c0_i32 = arith.constant 0 : i32
    %c0_i32_0 = arith.constant 0 : i32
    %c0_i32_1 = arith.constant 0 : i32
    return %c0_i32, %c0_i32_0 : i32, i32
  }
  func.func @transform_12(%arg0: i32) -> (i32, i32) {
    %c0_i32 = arith.constant 0 : i32
    %c0_i32_0 = arith.constant 0 : i32
    %c0_i32_1 = arith.constant 0 : i32
    return %c0_i32, %c0_i32_0 : i32, i32
  }
  func.func @transform_13(%arg0: i32) -> (i32, i32) {
    %c0_i32 = arith.constant 0 : i32
    %c0_i32_0 = arith.constant 0 : i32
    %c0_i32_1 = arith.constant 0 : i32
    return %c0_i32, %c0_i32_0 : i32, i32
  }
  func.func @transform_14(%arg0: i32) -> (i32, i32) {
    %c0_i32 = arith.constant 0 : i32
    %c0_i32_0 = arith.constant 0 : i32
    %c0_i32_1 = arith.constant 0 : i32
    return %c0_i32, %c0_i32_0 : i32, i32
  }
  func.func @transform_15(%arg0: i32) -> (i32, i32) {
    %c0_i32 = arith.constant 0 : i32
    %c0_i32_0 = arith.constant 0 : i32
    return %arg0, %c0_i32 : i32, i32
  }
}

</mosaic_0001>

<bundles_post_ra>
// kernel: mlp_autoencoder_forward.1
= control target key start
LH: loop header
LB: loop body
LE: loop exit
PB: predicated region body
PF: predicated region fallthrough
CT: control target
= control target key end

     0   :  { %vm468_vm0 = vcmask 130048   ;;  %vm726_vm1 = vcmask 523264   ;;  %vm783_vm2 = vcmask 261120   ;;  %vm1439_vm3 = vcmask 125952   ;;  %s2869_s1 = inlined_call_operand.vmem [shape: bf16[784,128], index: 1, kind: input, shape index: {}]   ;;  %s2870_s2 = inlined_call_operand.vmem [shape: f32[1,128], index: 2, kind: input, shape index: {}]   ;;  %s2871_s0 = inlined_call_operand.vmem [shape: f32[16,784], index: 0, kind: input, shape index: {}]   ;;  %s2872_s4 = inlined_call_operand.vmem [shape: f32[1,64], index: 4, kind: input, shape index: {}]   ;;  %s2873_s3 = inlined_call_operand.vmem [shape: bf16[128,64], index: 3, kind: input, shape index: {}]   ;;  %s2874_s6 = inlined_call_operand.vmem [shape: f32[1,32], index: 6, kind: input, shape index: {}]   ;;  %s2875_s5 = inlined_call_operand.vmem [shape: bf16[64,32], index: 5, kind: input, shape index: {}]   ;;  %s2876_s8 = inlined_call_operand.vmem [shape: f32[1,32], index: 8, kind: input, shape index: {}]   ;;  %s2877_s7 = inlined_call_operand.vmem [shape: bf16[32,32], index: 7, kind: input, shape index: {}]   ;;  %s2878_s10 = inlined_call_operand.vmem [shape: f32[1,64], index: 10, kind: input, shape index: {}]   ;;  %s2879_s9 = inlined_call_operand.vmem [shape: bf16[32,64], index: 9, kind: input, shape index: {}]   ;;  %s2880_s12 = inlined_call_operand.vmem [shape: f32[1,128], index: 12, kind: input, shape index: {}]   ;;  %s2881_s11 = inlined_call_operand.vmem [shape: bf16[64,128], index: 11, kind: input, shape index: {}]   ;;  %s2882_s13 = inlined_call_operand.vmem [shape: bf16[128,784], index: 13, kind: input, shape index: {}]   ;;  %s2883_s14 = inlined_call_operand.vmem [shape: f32[1,784], index: 14, kind: input, shape index: {}]   ;;  %s2884_s15 = inlined_call_operand.vmem [shape: bf16[16,784], index: 15, kind: output, shape index: {}]  }
   0x1   :  { %v1961_v0 = vld [vmem:[%s2869_s1 + $0x38] sm:$0xff]  ;;  %v1960_v4 = vld [vmem:[%s2869_s1 + $0x30] sm:$0xff]  ;;  %v1959_v8 = vld [vmem:[%s2869_s1 + $0x28] sm:$0xff] }
   0x2   :  { %v1969_v1 = vld [vmem:[%s2869_s1 + $0x78] sm:$0xff]  ;;  %472 = vmatpush.bf16.msra.mxu0 %v1961_v0  ;;  %v1968_v5 = vld [vmem:[%s2869_s1 + $0x70] sm:$0xff]  ;;  %v1967_v9 = vld [vmem:[%s2869_s1 + $0x68] sm:$0xff] }
   0x3   :  { %v1977_v2 = vld [vmem:[%s2869_s1 + $0xb8] sm:$0xff]  ;;  %486 = vmatpush.bf16.msra.mxu1 %v1969_v1  ;;  %v1976_v6 = vld [vmem:[%s2869_s1 + $0xb0] sm:$0xff]  ;;  %v1975_v10 = vld [vmem:[%s2869_s1 + $0xa8] sm:$0xff] }
   0x4   :  { %v1985_v3 = vld [vmem:[%s2869_s1 + $0xf8] sm:$0xff]  ;;  %500 = vmatpush.bf16.msra.mxu2 %v1977_v2  ;;  %v1984_v7 = vld [vmem:[%s2869_s1 + $0xf0] sm:$0xff]  ;;  %v1983_v11 = vld [vmem:[%s2869_s1 + $0xe8] sm:$0xff] }
   0x5   :  { %514 = vmatpush.bf16.msra.mxu3 %v1985_v3  ;;  %v1958_v12 = vld [vmem:[%s2869_s1 + $0x20] sm:$0xff]  ;;  %v1957_v16 = vld [vmem:[%s2869_s1 + $0x18] sm:$0xff]  ;;  %v1956_v20 = vld [vmem:[%s2869_s1 + $0x10] sm:$0xff] }
   0x6   :  { %473 = vmatpush.bf16.msra.mxu0 %v1960_v4  ;;  %v1966_v13 = vld [vmem:[%s2869_s1 + $0x60] sm:$0xff]  ;;  %v1965_v17 = vld [vmem:[%s2869_s1 + $0x58] sm:$0xff]  ;;  %v1964_v21 = vld [vmem:[%s2869_s1 + $0x50] sm:$0xff] }
   0x7   :  { %487 = vmatpush.bf16.msra.mxu1 %v1968_v5  ;;  %v1974_v14 = vld [vmem:[%s2869_s1 + $0xa0] sm:$0xff]  ;;  %v1973_v18 = vld [vmem:[%s2869_s1 + $0x98] sm:$0xff]  ;;  %v1972_v22 = vld [vmem:[%s2869_s1 + $0x90] sm:$0xff] }
   0x8   :  { %501 = vmatpush.bf16.msra.mxu2 %v1976_v6  ;;  %v1982_v15 = vld [vmem:[%s2869_s1 + $0xe0] sm:$0xff]  ;;  %v1981_v19 = vld [vmem:[%s2869_s1 + $0xd8] sm:$0xff]  ;;  %v1980_v23 = vld [vmem:[%s2869_s1 + $0xd0] sm:$0xff] }
   0x9   :  { %515 = vmatpush.bf16.msra.mxu3 %v1984_v7  ;;  %v1955_v24 = vld [vmem:[%s2869_s1 + $0x8] sm:$0xff]  ;;  %v1954_v28 = vld [vmem:[%s2869_s1] sm:$0xff]  ;;  %v58_v31 = vld [vmem:[%s2871_s0 + $0x38] sm:$0xff] }
   0xa   :  { %474 = vmatpush.bf16.msra.mxu0 %v1959_v8  ;;  %v1963_v25 = vld [vmem:[%s2869_s1 + $0x48] sm:$0xff]  ;;  %v1962_v29 = vld [vmem:[%s2869_s1 + $0x40] sm:$0xff]  ;;  %v1993_v34 = vld [vmem:[%s2869_s1 + $0x138] sm:$0xff] }
   0xb   :  { %488 = vmatpush.bf16.msra.mxu1 %v1967_v9  ;;  %v1971_v26 = vld [vmem:[%s2869_s1 + $0x88] sm:$0xff]  ;;  %v51_v30 = vld [vmem:[%s2871_s0] sm:$0xff]  ;;  %v2001_v35 = vld [vmem:[%s2869_s1 + $0x178] sm:$0xff] }
   0xc   :  { %502 = vmatpush.bf16.msra.mxu2 %v1975_v10  ;;  %v1979_v27 = vld [vmem:[%s2869_s1 + $0xc8] sm:$0xff]  ;;  %v59_v33 = vld [vmem:[%s2871_s0 + $0x40] sm:$0xff]  ;;  %v53_v38 = vld [vmem:[%s2871_s0 + $0x10] sm:$0xff]  ;;  %v65_v40 = vpack.c.bf16 %v58_v31, %v51_v30 }
   0xd   :  { %516 = vmatpush.bf16.msra.mxu3 %v1983_v11  ;;  %v52_v32 = vld [vmem:[%s2871_s0 + $0x8] sm:$0xff]  ;;  %v1970_v36 = vld [vmem:[%s2869_s1 + $0x80] sm:$0xff]  ;;  %v54_v41 = vld [vmem:[%s2871_s0 + $0x18] sm:$0xff] }
   0xe   :  { %475 = vmatpush.bf16.msra.mxu0 %v1958_v12  ;;  %v1978_v37 = vld [vmem:[%s2869_s1 + $0xc0] sm:$0xff]  ;;  %v60_v39 = vld [vmem:[%s2871_s0 + $0x48] sm:$0xff]  ;;  %v61_v42 = vld [vmem:[%s2871_s0 + $0x50] sm:$0xff]  ;;  %v66_v43 = vpack.c.bf16 %v59_v33, %v52_v32 }
   0xf   :  { %489 = vmatpush.bf16.msra.mxu1 %v1966_v13  ;;  %v2002_v44 = vld [vmem:[%s2869_s1 + $0x180] sm:$0xff]  ;;  %v1992_v45 = vld [vmem:[%s2869_s1 + $0x130] sm:$0xff]  ;;  %v67_v47 = vpack.c.bf16 %v60_v39, %v53_v38  ;;  %v68_v48 = vpack.c.bf16 %v61_v42, %v54_v41  ;;  %v1991_v49 = vld [vmem:[%s2869_s1 + $0x128] sm:$0xff] }
  0x10   :  { %503 = vmatpush.bf16.msra.mxu2 %v1974_v14  ;;  %v2000_v46 = vld [vmem:[%s2869_s1 + $0x170] sm:$0xff]  ;;  %v1999_v50 = vld [vmem:[%s2869_s1 + $0x168] sm:$0xff]  ;;  %v1990_v51 = vld [vmem:[%s2869_s1 + $0x120] sm:$0xff] }
  0x11   :  { %517 = vmatpush.bf16.msra.mxu3 %v1982_v15  ;;  %v1998_v52 = vld [vmem:[%s2869_s1 + $0x160] sm:$0xff]  ;;  %v1989_v53 = vld [vmem:[%s2869_s1 + $0x118] sm:$0xff]  ;;  %v57_v55 = vld [vmem:[%s2871_s0 + $0x30] sm:$0xff] }
  0x12   :  { %476 = vmatpush.bf16.msra.mxu0 %v1957_v16  ;;  %v1997_v54 = vld [vmem:[%s2869_s1 + $0x158] sm:$0xff]  ;;  %v64_v56 = vld [vmem:[%s2871_s0 + $0x68] sm:$0xff]  ;;  %v1988_v57 = vld [vmem:[%s2869_s1 + $0x110] sm:$0xff] }
  0x13   :  { %490 = vmatpush.bf16.msra.mxu1 %v1965_v17  ;;  %v1996_v58 = vld [vmem:[%s2869_s1 + $0x150] sm:$0xff]  ;;  %v71_v59 = vpack.c.bf16 %v64_v56, %v57_v55  ;;  %v1987_v60 = vld [vmem:[%s2869_s1 + $0x108] sm:$0xff]  ;;  %v1986_v62 = vld [vmem:[%s2869_s1 + $0x100] sm:$0xff] }
  0x14   :  { %504 = vmatpush.bf16.msra.mxu2 %v1973_v18  ;;  %v1995_v61 = vld [vmem:[%s2869_s1 + $0x148] sm:$0xff]  ;;  %v1994_v63 = vld [vmem:[%s2869_s1 + $0x140] sm:$0xff]  ;;  %v62_v1 = vld [vmem:[%s2871_s0 + $0x58] sm:$0xff] }
  0x15   :  { %518 = vmatpush.bf16.msra.mxu3 %v1981_v19  ;;  %v55_v0 = vld [vmem:[%s2871_s0 + $0x20] sm:$0xff]  ;;  %v56_v2 = vld [vmem:[%s2871_s0 + $0x28] sm:$0xff]  ;;  %v2010_v6 = vld [vmem:[%s2873_s3 + $0x38] sm:$0xff] }
  0x16   :  { %477 = vmatpush.bf16.msra.mxu0 %v1956_v20  ;;  %v63_v3 = vld [vmem:[%s2871_s0 + $0x60] sm:$0xff]  ;;  %v69_v4 = vpack.c.bf16 %v62_v1, %v55_v0  ;;  %v2009_v7 = vld [vmem:[%s2873_s3 + $0x30] sm:$0xff]  ;;  %v2008_v9 = vld [vmem:[%s2873_s3 + $0x28] sm:$0xff] }
  0x17   :  { %491 = vmatpush.bf16.msra.mxu1 %v1964_v21  ;;  %v70_v5 = vpack.c.bf16 %v63_v3, %v56_v2  ;;  %v2079_v12 = vld [vmem:[%s2870_s2] ss:$0 sm:$0xff]  ;;  %v2006_v15 = vld [vmem:[%s2873_s3 + $0x18] sm:$0xff]  ;;  %v2005_v18 = vld [vmem:[%s2873_s3 + $0x10] sm:$0xff] }
  0x18   :  { %505 = vmatpush.bf16.msra.mxu2 %v1972_v22  ;;  %v2007_v13 = vld [vmem:[%s2873_s3 + $0x20] sm:$0xff]  ;;  %v2012_v0 = vld [vmem:[%s2875_s5 + $0x8] sm:$0xff] }
  0x19   :  { %519 = vmatpush.bf16.msra.mxu3 %v1980_v23  ;;  %v2011_v1 = vld [vmem:[%s2875_s5] sm:$0xff] }
  0x1a   :  { %478 = vmatpush.bf16.msra.mxu0 %v1955_v24  ;;  %v2004_v24 = vld [vmem:[%s2873_s3 + $0x8] sm:$0xff]  ;;  %v2080_v2 = vld [vmem:[%s2872_s4] ss:$0 sm:$0xff] }
  0x1b   :  { %492 = vmatpush.bf16.msra.mxu1 %v1963_v25 }
  0x1c   :  { %506 = vmatpush.bf16.msra.mxu2 %v1971_v26 }
  0x1d   :  { %520 = vmatpush.bf16.msra.mxu3 %v1979_v27  ;;  %v2003_v27 = vld [vmem:[%s2873_s3] sm:$0xff] }
  0x1e   :  { %479 = vmatpush.bf16.msra.mxu0 %v1954_v28 }
  0x1f   :  { %493 = vmatpush.bf16.msra.mxu1 %v1962_v29 }
  0x20   :  { %507 = vmatpush.bf16.msra.mxu2 %v1970_v36 }
  0x21   :  { %521 = vmatpush.bf16.msra.mxu3 %v1978_v37  ;;  %480 = vmatmul.bf16.vlgmr.msra.gmra.mxu0 %v65_v40 }
  0x22   :  { %528 = vmatpush.bf16.msrb.mxu0 %v1993_v34  ;;  %494 = vmatmul.bf16.vlgmr.msra.gmra.mxu1 %v66_v43 }
  0x23   :  { %542 = vmatpush.bf16.msrb.mxu1 %v2001_v35  ;;  %508 = vmatmul.bf16.vlgmr.msra.gmra.mxu2 %v67_v47 }
  0x24   :  { %563 = vmatpush.bf16.msrb.mxu2 %v2002_v44  ;;  %522 = vmatmul.bf16.vlgmr.msra.gmra.mxu3 %v68_v48 }
  0x25   :  { %657 = vmatpush.bf16.msrb.mxu3 %v2010_v6 }
  0x26   :  { %529 = vmatpush.bf16.msrb.mxu0 %v1992_v45 }
  0x27   :  { %543 = vmatpush.bf16.msrb.mxu1 %v2000_v46 }
  0x29   :  { %658 = vmatpush.bf16.msrb.mxu3 %v2009_v7 }
  0x2a   :  { %530 = vmatpush.bf16.msrb.mxu0 %v1991_v49 }
  0x2b   :  { %544 = vmatpush.bf16.msrb.mxu1 %v1999_v50 }
  0x2d   :  { %659 = vmatpush.bf16.msrb.mxu3 %v2008_v9 }
  0x2e   :  { %531 = vmatpush.bf16.msrb.mxu0 %v1990_v51 }
  0x2f   :  { %545 = vmatpush.bf16.msrb.mxu1 %v1998_v52 }
  0x31   :  { %660 = vmatpush.bf16.msrb.mxu3 %v2007_v13 }
  0x32   :  { %532 = vmatpush.bf16.msrb.mxu0 %v1989_v53 }
  0x33   :  { %546 = vmatpush.bf16.msrb.mxu1 %v1997_v54  ;;  %1645 = vmatmul.msk.bf16.vlgmr.msrb.gmra.mxu2 %vm468_vm0, %v71_v59 }
  0x35   :  { %661 = vmatpush.bf16.msrb.mxu3 %v2006_v15 }
  0x36   :  { %533 = vmatpush.bf16.msrb.mxu0 %v1988_v57 }
  0x37   :  { %547 = vmatpush.bf16.msrb.mxu1 %v1996_v58 }
  0x39   :  { %662 = vmatpush.bf16.msrb.mxu3 %v2005_v18 }
  0x3a   :  { %534 = vmatpush.bf16.msrb.mxu0 %v1987_v60 }
  0x3b   :  { %548 = vmatpush.bf16.msrb.mxu1 %v1995_v61 }
  0x3d   :  { %663 = vmatpush.bf16.msrb.mxu3 %v2004_v24 }
  0x3e   :  { %535 = vmatpush.bf16.msrb.mxu0 %v1986_v62  ;;  %v2014_v62 = vld [vmem:[%s2875_s5 + $0x18] sm:$0xff] }
  0x3f   :  { %549 = vmatpush.bf16.msrb.mxu1 %v1994_v63  ;;  %734 = vmatpush.bf16.msra.mxu2 %v2014_v62  ;;  %v2013_v63 = vld [vmem:[%s2875_s5 + $0x10] sm:$0xff] }
  0x41   :  { %536 = vmatmul.bf16.vlgmr.msrb.gmra.mxu0 %v69_v4  ;;  %664 = vmatpush.bf16.msrb.mxu3 %v2003_v27  ;;  %v2015_v27 = vld [vmem:[%s2877_s7] sm:$0xff] }
  0x42   :  { %550 = vmatmul.bf16.vlgmr.msrb.gmra.mxu1 %v70_v5 }
  0x43   :  { %735 = vmatpush.bf16.msra.mxu2 %v2013_v63 }
  0x47   :  { %736 = vmatpush.bf16.msra.mxu2 %v2012_v0 }
  0x4b   :  { %737 = vmatpush.bf16.msra.mxu2 %v2011_v1 }
  0x9e   :  { %v481_v8 = vpop.f32.mrf.mxu0 }
  0x9f   :  { %v495_v10 = vpop.f32.mrf.mxu1  ;;  %v482_v14 = vadd.f32 %v2079_v12, %v481_v8 }
  0xa1   :  { %v496_v16 = vadd.f32 %v495_v10, %v482_v14 }
  0xa6   :  { %v509_v11 = vpop.f32.mrf.mxu2  ;;  %v483_v17 = vpop.f32.mrf.mxu0 }
  0xa7   :  { %v497_v19 = vpop.f32.mrf.mxu1  ;;  %v523_v21 = vpop.f32.mrf.mxu3  ;;  %v510_v22 = vadd.f32 %v509_v11, %v496_v16  ;;  %v484_v23 = vadd.f32 %v2079_v12, %v483_v17 }
  0xa9   :  { %v524_v25 = vadd.f32 %v523_v21, %v510_v22  ;;  %v498_v26 = vadd.f32 %v497_v19, %v484_v23 }
  0xae   :  { %v511_v20 = vpop.f32.mrf.mxu2 }
  0xaf   :  { %v512_v32 = vadd.f32 %v511_v20, %v498_v26  ;;  %v525_v34 = vpop.f32.mrf.mxu3  ;;  %v2016_v26 = vld [vmem:[%s2877_s7 + $0x8] sm:$0xff] }
  0xb0   :  { %793 = vmatpush.bf16.msrb.mxu2 %v2016_v26  ;;  %v1930_v26 = vld [vmem:[%s2882_s13 + $0x1a4] sm:$0xf0] }
  0xb1   :  { %v526_v36 = vadd.f32 %v525_v34, %v512_v32 }
  0xb4   :  { %794 = vmatpush.bf16.msrb.mxu2 %v2015_v27 }
  0xb6   :  { %v565_v31 = vpop.f32.mrf.mxu2 }
  0xbe   :  { %v537_v28 = vpop.f32.mrf.mxu0  ;;  %v567_v44 = vpop.f32.mrf.mxu2 }
  0xbf   :  { %v551_v29 = vpop.f32.mrf.mxu1  ;;  %v538_v30 = vadd.f32 %v537_v28, %v524_v25  ;;  %v2081_v28 = vld [vmem:[%s2874_s6] ss:$0 sm:$0xff] }
  0xc1   :  { %v552_v33 = vadd.f32 %v551_v29, %v538_v30 }
  0xc3   :  { %v566_v35 = vadd.f32 %v565_v31, %v552_v33 }
  0xc5   :  { %v572_v37 = vmul.f32 0.044715, %v566_v35  ;;  %v570_v56 = vmul.f32 0.5, %v566_v35 }
  0xc6   :  { %v539_v38 = vpop.f32.mrf.mxu0 }
  0xc7   :  { %v540_v39 = vadd.f32 %v539_v38, %v526_v36  ;;  %v574_v40 = vmul.f32 %v572_v37, %v566_v35  ;;  %v553_v41 = vpop.f32.mrf.mxu1 }
  0xc9   :  { %v554_v42 = vadd.f32 %v553_v41, %v540_v39  ;;  %v576_v43 = vmul.f32 %v574_v40, %v566_v35 }
  0xcb   :  { %v568_v45 = vadd.f32 %v567_v44, %v554_v42  ;;  %v578_v46 = vadd.f32 %v576_v43, %v566_v35 }
  0xcd   :  { %v573_v47 = vmul.f32 0.044715, %v568_v45  ;;  %v580_v49 = vmul.f32 0.7978846, %v578_v46  ;;  %v571_v57 = vmul.f32 0.5, %v568_v45 }
  0xcf   :  { %v575_v48 = vmul.f32 %v573_v47, %v568_v45  ;;  %2085 = vtanh.f32 %v580_v49 }
  0xd1   :  { %v577_v50 = vmul.f32 %v575_v48, %v568_v45 }
  0xd3   :  { %v579_v51 = vadd.f32 %v577_v50, %v568_v45 }
  0xd5   :  { %v581_v52 = vmul.f32 0.7978846, %v579_v51  ;;  %v2086_v53 = vpop.eup %2085 }
  0xd6   :  { %v584_v54 = vadd.f32 1.0, %v2086_v53  ;;  %v2017_v53 = vld [vmem:[%s2879_s9] sm:$0xff] }
  0xd7   :  { %2087 = vtanh.f32 %v581_v52  ;;  %v2018_v52 = vld [vmem:[%s2879_s9 + $0x8] sm:$0xff] }
  0xd8   :  { %v586_v59 = vmul.f32 %v584_v54, %v570_v56  ;;  %849 = vmatpush.bf16.msra.mxu1 %v2018_v52  ;;  %v2082_v54 = vld [vmem:[%s2876_s8] ss:$0 sm:$0xff] }
  0xdc   :  { %850 = vmatpush.bf16.msra.mxu1 %v2017_v53 }
  0xdd   :  { %v2088_v55 = vpop.eup %2087 }
  0xde   :  { %v585_v58 = vadd.f32 1.0, %v2088_v55 }
  0xe0   :  { %v587_v60 = vmul.f32 %v585_v58, %v571_v57 }
  0xe2   :  { %v588_v61 = vpack.c.bf16 %v587_v60, %v586_v59 }
  0xe4   :  { %665 = vmatmul.bf16.vlgmr.msrb.gmra.mxu3 %v588_v61 }
 0x167   :  { %v666_v3 = vpop.f32.mrf.mxu3 }
 0x168   :  { %v667_v4 = vadd.f32 %v2080_v2, %v666_v3 }
 0x16a   :  { %v673_v5 = vmul.f32 0.044715, %v667_v4  ;;  %v671_v20 = vmul.f32 0.5, %v667_v4 }
 0x16c   :  { %v675_v6 = vmul.f32 %v673_v5, %v667_v4 }
 0x16e   :  { %v677_v7 = vmul.f32 %v675_v6, %v667_v4 }
 0x16f   :  { %v668_v8 = vpop.f32.mrf.mxu3 }
 0x170   :  { %v679_v9 = vadd.f32 %v677_v7, %v667_v4  ;;  %v669_v10 = vadd.f32 %v2080_v2, %v668_v8 }
 0x172   :  { %v674_v11 = vmul.f32 0.044715, %v669_v10  ;;  %v681_v12 = vmul.f32 0.7978846, %v679_v9  ;;  %v672_v21 = vmul.f32 0.5, %v669_v10 }
 0x174   :  { %v676_v13 = vmul.f32 %v674_v11, %v669_v10  ;;  %2089 = vtanh.f32 %v681_v12 }
 0x176   :  { %v678_v14 = vmul.f32 %v676_v13, %v669_v10 }
 0x178   :  { %v680_v15 = vadd.f32 %v678_v14, %v669_v10  ;;  %v2022_v14 = vld [vmem:[%s2881_s11 + $0x18] sm:$0xff] }
 0x17a   :  { %v682_v16 = vmul.f32 0.7978846, %v680_v15  ;;  %v2090_v17 = vpop.eup %2089  ;;  %v2021_v15 = vld [vmem:[%s2881_s11 + $0x10] sm:$0xff] }
 0x17b   :  { %v685_v18 = vadd.f32 1.0, %v2090_v17  ;;  %v2019_v17 = vld [vmem:[%s2881_s11] sm:$0xff] }
 0x17c   :  { %2091 = vtanh.f32 %v682_v16  ;;  %v2020_v16 = vld [vmem:[%s2881_s11 + $0x8] sm:$0xff] }
 0x17d   :  { %v687_v23 = vmul.f32 %v685_v18, %v671_v20  ;;  %v2083_v18 = vld [vmem:[%s2878_s10] ss:$0 sm:$0xff] }
 0x182   :  { %v2092_v19 = vpop.eup %2091 }
 0x183   :  { %v686_v22 = vadd.f32 1.0, %v2092_v19 }
 0x185   :  { %v688_v24 = vmul.f32 %v686_v22, %v672_v21  ;;  %v1928_v21 = vld [vmem:[%s2882_s13 + $0x188] sm:$0xf]  ;;  %v2075_v22 = vld [vmem:[%s2882_s13 + $0x1a0] sm:$0xf0] }
 0x187   :  { %v689_v25 = vpack.c.bf16 %v688_v24, %v687_v23  ;;  %v2072_v23 = vld [vmem:[%s2882_s13 + $0x18c] sm:$0xf] }
 0x188   :  { %v1933_v27 = vor.u32 %v2072_v23, %v1930_v26  ;;  %v2048_v23 = vld [vmem:[%s2882_s13 + $0xc8] sm:$0xf0]  ;;  %v2066_v26 = vld [vmem:[%s2882_s13 + $0x15c] sm:$0xf] }
 0x189   :  { %1694 = vmatmul.msk.bf16.vlgmr.msra.gmra.mxu2 %vm726_vm1, %v689_v25  ;;  %v1929_v25 = vor.u32 %v2075_v22, %v1928_v21  ;;  %v1818_v21 = vld [vmem:[%s2882_s13 + $0xc4] sm:$0xf0]  ;;  %v1824_v22 = vld [vmem:[%s2882_s13 + $0xb0] sm:$0xf] }
 0x18a   :  { %919 = vmatpush.bf16.msra.mxu2 %v2022_v14  ;;  %1330 = vmatpush.bf16.msra.mxu0 %v1933_v27  ;;  %v2073_v14 = vld [vmem:[%s2882_s13 + $0x194] sm:$0xf]  ;;  %v1910_v27 = vld [vmem:[%s2882_s13 + $0x174] sm:$0xf0] }
 0x18b   :  { %1316 = vmatpush.bf16.msra.mxu3 %v1929_v25  ;;  %v1825_v25 = vor.u32 %v2048_v23, %v1824_v22  ;;  %v2031_v22 = vld [vmem:[%s2882_s13 + $0x44] sm:$0xf]  ;;  %v1770_v23 = vld [vmem:[%s2882_s13 + $0x5c] sm:$0xf0] }
 0x18e   :  { %920 = vmatpush.bf16.msra.mxu2 %v2021_v15  ;;  %v1938_v15 = vld [vmem:[%s2882_s13 + $0x1ac] sm:$0xf0] }
 0x192   :  { %921 = vmatpush.bf16.msra.mxu2 %v2020_v16  ;;  %v1941_v16 = vor.u32 %v2073_v14, %v1938_v15  ;;  %v2070_v14 = vld [vmem:[%s2882_s13 + $0x178] sm:$0xf0]  ;;  %v2067_v15 = vld [vmem:[%s2882_s13 + $0x164] sm:$0xf] }
 0x196   :  { %922 = vmatpush.bf16.msra.mxu2 %v2019_v17  ;;  %v1816_v17 = vld [vmem:[%s2882_s13 + $0xa8] sm:$0xf] }
 0x20c   :  { %v739_v29 = vpop.f32.mrf.mxu2 }
 0x20d   :  { %v740_v30 = vadd.f32 %v2081_v28, %v739_v29  ;;  %v2076_v29 = vld [vmem:[%s2882_s13 + $0x1a8] sm:$0xf0] }
 0x20f   :  { %v746_v31 = vmul.f32 0.044715, %v740_v30  ;;  %v744_v46 = vmul.f32 0.5, %v740_v30 }
 0x211   :  { %v748_v32 = vmul.f32 %v746_v31, %v740_v30 }
 0x213   :  { %v750_v33 = vmul.f32 %v748_v32, %v740_v30 }
 0x214   :  { %v741_v34 = vpop.f32.mrf.mxu2 }
 0x215   :  { %v752_v35 = vadd.f32 %v750_v33, %v740_v30  ;;  %v742_v36 = vadd.f32 %v2081_v28, %v741_v34  ;;  %v1936_v28 = vld [vmem:[%s2882_s13 + $0x190] sm:$0xf]  ;;  %v2068_v33 = vld [vmem:[%s2882_s13 + $0x168] sm:$0xf0]  ;;  %v2065_v34 = vld [vmem:[%s2882_s13 + $0x154] sm:$0xf] }
 0x216   :  { %v1900_v30 = vld [vmem:[%s2882_s13 + $0x150] sm:$0xf]  ;;  %v1937_v32 = vor.u32 %v2076_v29, %v1936_v28  ;;  %v1913_v28 = vor.u32 %v2066_v26, %v1910_v27  ;;  %v2063_v26 = vld [vmem:[%s2882_s13 + $0x140] sm:$0xf0]  ;;  %v2060_v27 = vld [vmem:[%s2882_s13 + $0x12c] sm:$0xf] }
 0x217   :  { %v747_v37 = vmul.f32 0.044715, %v742_v36  ;;  %v754_v38 = vmul.f32 0.7978846, %v752_v35  ;;  %v745_v47 = vmul.f32 0.5, %v742_v36 }
 0x218   :  { %v1902_v35 = vld [vmem:[%s2882_s13 + $0x16c] sm:$0xf0]  ;;  %1344 = vmatpush.bf16.msrb.mxu1 %v1937_v32 }
 0x219   :  { %v749_v39 = vmul.f32 %v747_v37, %v742_v36  ;;  %2093 = vtanh.f32 %v754_v38  ;;  %v1905_v37 = vor.u32 %v2065_v34, %v1902_v35  ;;  %v1908_v38 = vld [vmem:[%s2882_s13 + $0x158] sm:$0xf]  ;;  %v1788_v29 = vld [vmem:[%s2882_s13 + $0x70] sm:$0xf]  ;;  %v2041_v35 = vld [vmem:[%s2882_s13 + $0x90] sm:$0xf0] }
 0x21a   :  { %v1796_v34 = vld [vmem:[%s2882_s13 + $0x78] sm:$0xf] }
 0x21b   :  { %v751_v40 = vmul.f32 %v749_v39, %v742_v36  ;;  %v2069_v39 = vld [vmem:[%s2882_s13 + $0x170] sm:$0xf0]  ;;  %1331 = vmatpush.bf16.msra.mxu0 %v1905_v37  ;;  %v1797_v37 = vor.u32 %v2041_v35, %v1796_v34  ;;  %v2024_v35 = vld [vmem:[%s2882_s13 + $0xc] sm:$0xf] }
 0x21d   :  { %v753_v41 = vadd.f32 %v751_v40, %v742_v36  ;;  %v1901_v36 = vor.u32 %v2068_v33, %v1900_v30  ;;  %v1872_v40 = vld [vmem:[%s2882_s13 + $0x118] sm:$0xf]  ;;  %v2040_v30 = vld [vmem:[%s2882_s13 + $0x88] sm:$0xf0]  ;;  %v1790_v33 = vld [vmem:[%s2882_s13 + $0x8c] sm:$0xf0] }
 0x21e   :  { %v1789_v32 = vor.u32 %v2040_v30, %v1788_v29 }
 0x21f   :  { %v755_v42 = vmul.f32 0.7978846, %v753_v41  ;;  %v2094_v43 = vpop.eup %2093  ;;  %1317 = vmatpush.bf16.msra.mxu3 %v1901_v36 }
 0x220   :  { %v758_v44 = vadd.f32 1.0, %v2094_v43  ;;  %v2061_v43 = vld [vmem:[%s2882_s13 + $0x130] sm:$0xf0] }
 0x221   :  { %2095 = vtanh.f32 %v755_v42  ;;  %v1909_v42 = vor.u32 %v2069_v39, %v1908_v38  ;;  %v2059_v38 = vld [vmem:[%s2882_s13 + $0x124] sm:$0xf]  ;;  %v1882_v39 = vld [vmem:[%s2882_s13 + $0x13c] sm:$0xf0] }
 0x222   :  { %v760_v49 = vmul.f32 %v758_v44, %v744_v46  ;;  %v2058_v44 = vld [vmem:[%s2882_s13 + $0x11c] sm:$0xf] }
 0x223   :  { %1345 = vmatpush.bf16.msrb.mxu1 %v1909_v42  ;;  %v2033_v42 = vld [vmem:[%s2882_s13 + $0x50] sm:$0xf0] }
 0x227   :  { %v2096_v45 = vpop.eup %2095 }
 0x228   :  { %v759_v48 = vadd.f32 1.0, %v2096_v45  ;;  %v1874_v45 = vld [vmem:[%s2882_s13 + $0x134] sm:$0xf0] }
 0x229   :  { %v1877_v52 = vor.u32 %v2058_v44, %v1874_v45  ;;  %v1762_v45 = vld [vmem:[%s2882_s13 + $0x54] sm:$0xf0] }
 0x22a   :  { %v761_v50 = vmul.f32 %v759_v48, %v745_v47  ;;  %v1880_v47 = vld [vmem:[%s2882_s13 + $0x120] sm:$0xf]  ;;  %v2062_v48 = vld [vmem:[%s2882_s13 + $0x138] sm:$0xf0] }
 0x22b   :  { %1332 = vmatpush.bf16.msra.mxu0 %v1877_v52 }
 0x22c   :  { %v762_v51 = vpack.c.bf16 %v761_v50, %v760_v49 }
 0x22e   :  { %1703 = vmatmul.msk.bf16.vlgmr.msrb.gmra.mxu2 %vm783_vm2, %v762_v51  ;;  %v1873_v51 = vor.u32 %v2061_v43, %v1872_v40  ;;  %v1885_v40 = vor.u32 %v2059_v38, %v1882_v39  ;;  %v2030_v43 = vld [vmem:[%s2882_s13 + $0x3c] sm:$0xf]  ;;  %v2056_v39 = vld [vmem:[%s2882_s13 + $0x108] sm:$0xf0] }
 0x22f   :  { %1358 = vmatpush.bf16.msrb.mxu2 %v1941_v16  ;;  %v1918_v16 = vld [vmem:[%s2882_s13 + $0x17c] sm:$0xf0] }
 0x230   :  { %1318 = vmatpush.bf16.msra.mxu3 %v1873_v51  ;;  %v1854_v51 = vld [vmem:[%s2882_s13 + $0x104] sm:$0xf0] }
 0x233   :  { %1359 = vmatpush.bf16.msrb.mxu2 %v1913_v28  ;;  %v1890_v28 = vld [vmem:[%s2882_s13 + $0x144] sm:$0xf0] }
 0x234   :  { %v1893_v30 = vor.u32 %v2060_v27, %v1890_v28 }
 0x237   :  { %1360 = vmatpush.bf16.msrb.mxu2 %v1885_v40  ;;  %v2053_v40 = vld [vmem:[%s2882_s13 + $0xf4] sm:$0xf] }
 0x2b1   :  { %v796_v55 = vpop.f32.mrf.mxu2 }
 0x2b2   :  { %v797_v56 = vadd.f32 %v2082_v54, %v796_v55 }
 0x2b4   :  { %v803_v57 = vmul.f32 0.044715, %v797_v56  ;;  %v801_v8 = vmul.f32 0.5, %v797_v56 }
 0x2b6   :  { %v805_v58 = vmul.f32 %v803_v57, %v797_v56 }
 0x2b8   :  { %v807_v59 = vmul.f32 %v805_v58, %v797_v56 }
 0x2b9   :  { %v798_v60 = vpop.f32.mrf.mxu2 }
 0x2ba   :  { %v809_v61 = vadd.f32 %v807_v59, %v797_v56  ;;  %v799_v62 = vadd.f32 %v2082_v54, %v798_v60  ;;  %v1881_v54 = vor.u32 %v2062_v48, %v1880_v47  ;;  %v2034_v47 = vld [vmem:[%s2882_s13 + $0x58] sm:$0xf0]  ;;  %v1765_v48 = vor.u32 %v2030_v43, %v1762_v45  ;;  %v2057_v45 = vld [vmem:[%s2882_s13 + $0x110] sm:$0xf0] }
 0x2bc   :  { %v804_v63 = vmul.f32 0.044715, %v799_v62  ;;  %v811_v0 = vmul.f32 0.7978846, %v809_v61  ;;  %v802_v9 = vmul.f32 0.5, %v799_v62  ;;  %1346 = vmatpush.bf16.msrb.mxu1 %v1881_v54 }
 0x2bd   :  { %v2026_v54 = vld [vmem:[%s2882_s13 + $0x18] sm:$0xf0] }
 0x2be   :  { %v806_v1 = vmul.f32 %v804_v63, %v799_v62  ;;  %2097 = vtanh.f32 %v811_v0 }
 0x2c0   :  { %v808_v2 = vmul.f32 %v806_v1, %v799_v62 }
 0x2c2   :  { %v810_v3 = vadd.f32 %v808_v2, %v799_v62 }
 0x2c4   :  { %v812_v4 = vmul.f32 0.7978846, %v810_v3  ;;  %v2098_v5 = vpop.eup %2097 }
 0x2c5   :  { %v815_v6 = vadd.f32 1.0, %v2098_v5  ;;  %v1844_v5 = vld [vmem:[%s2882_s13 + $0xe0] sm:$0xf] }
 0x2c6   :  { %2099 = vtanh.f32 %v812_v4 }
 0x2c7   :  { %v817_v11 = vmul.f32 %v815_v6, %v801_v8  ;;  %v2054_v6 = vld [vmem:[%s2882_s13 + $0xf8] sm:$0xf0] }
 0x2c8   :  { %v1845_v8 = vor.u32 %v2054_v6, %v1844_v5 }
 0x2ca   :  { %1319 = vmatpush.bf16.msra.mxu3 %v1845_v8  ;;  %v2078_v8 = vld [vmem:[%s2882_s13 + $0x1b8] sm:$0xf0] }
 0x2cc   :  { %v2100_v7 = vpop.eup %2099 }
 0x2cd   :  { %v816_v10 = vadd.f32 1.0, %v2100_v7  ;;  %v2051_v7 = vld [vmem:[%s2882_s13 + $0xe4] sm:$0xf] }
 0x2cf   :  { %v818_v12 = vmul.f32 %v816_v10, %v802_v9  ;;  %v1846_v9 = vld [vmem:[%s2882_s13 + $0xfc] sm:$0xf0]  ;;  %v1852_v10 = vld [vmem:[%s2882_s13 + $0xe8] sm:$0xf] }
 0x2d1   :  { %v819_v13 = vpack.c.bf16 %v818_v12, %v817_v11  ;;  %v2055_v11 = vld [vmem:[%s2882_s13 + $0x100] sm:$0xf0]  ;;  %v1849_v12 = vor.u32 %v2051_v7, %v1846_v9  ;;  %v1952_v7 = vld [vmem:[%s2882_s13 + $0x1a0] sm:$0xf] }
 0x2d2   :  { %v1953_v9 = vor.u32 %v2078_v8, %v1952_v7  ;;  %v2032_v7 = vld [vmem:[%s2882_s13 + $0x4c] sm:$0xf]  ;;  %v1778_v8 = vld [vmem:[%s2882_s13 + $0x64] sm:$0xf0] }
 0x2d3   :  { %1712 = vmatmul.msk.bf16.vlgmr.msra.gmra.mxu1 %vm783_vm2, %v819_v13  ;;  %v1853_v13 = vor.u32 %v2055_v11, %v1852_v10  ;;  %1333 = vmatpush.bf16.msra.mxu0 %v1849_v12  ;;  %v2038_v10 = vld [vmem:[%s2882_s13 + $0x7c] sm:$0xf]  ;;  %v1798_v11 = vld [vmem:[%s2882_s13 + $0x94] sm:$0xf0]  ;;  %v1916_v12 = vld [vmem:[%s2882_s13 + $0x160] sm:$0xf] }
 0x2d5   :  { %1347 = vmatpush.bf16.msrb.mxu1 %v1853_v13  ;;  %v1801_v13 = vor.u32 %v2038_v10, %v1798_v11  ;;  %v1784_v10 = vld [vmem:[%s2882_s13 + $0x50] sm:$0xf]  ;;  %v2036_v11 = vld [vmem:[%s2882_s13 + $0x68] sm:$0xf0] }
 0x2d9   :  { %1348 = vmatpush.bf16.msrb.mxu1 %v1825_v25  ;;  %v1773_v25 = vor.u32 %v2031_v22, %v1770_v23  ;;  %v1756_v23 = vld [vmem:[%s2882_s13 + $0x18] sm:$0xf] }
 0x2dd   :  { %1349 = vmatpush.bf16.msrb.mxu1 %v1797_v37  ;;  %v1860_v37 = vld [vmem:[%s2882_s13 + $0xf0] sm:$0xf] }
 0x350   :  { %v852_v19 = vpop.f32.mrf.mxu1 }
 0x351   :  { %v853_v20 = vadd.f32 %v2083_v18, %v852_v19  ;;  %v2044_v19 = vld [vmem:[%s2882_s13 + $0xac] sm:$0xf] }
 0x353   :  { %v859_v24 = vmul.f32 0.044715, %v853_v20  ;;  %v857_v63 = vmul.f32 0.5, %v853_v20 }
 0x355   :  { %v861_v31 = vmul.f32 %v859_v24, %v853_v20  ;;  %v1821_v24 = vor.u32 %v2044_v19, %v1818_v21  ;;  %v1924_v19 = vld [vmem:[%s2882_s13 + $0x168] sm:$0xf] }
 0x357   :  { %v863_v41 = vmul.f32 %v861_v31, %v853_v20  ;;  %1334 = vmatpush.bf16.msra.mxu0 %v1821_v24  ;;  %v2037_v31 = vld [vmem:[%s2882_s13 + $0x74] sm:$0xf]  ;;  %v1888_v24 = vld [vmem:[%s2882_s13 + $0x128] sm:$0xf] }
 0x358   :  { %v854_v46 = vpop.f32.mrf.mxu1  ;;  %v1793_v36 = vor.u32 %v2037_v31, %v1790_v33  ;;  %v1889_v29 = vor.u32 %v2063_v26, %v1888_v24  ;;  %v1896_v31 = vld [vmem:[%s2882_s13 + $0x130] sm:$0xf]  ;;  %v2084_v33 = vld [vmem:[%s2880_s12] ss:$0 sm:$0xff]  ;;  %v2029_v24 = vld [vmem:[%s2882_s13 + $0x30] sm:$0xf0] }
 0x359   :  { %v865_v49 = vadd.f32 %v863_v41, %v853_v20  ;;  %v855_v50 = vadd.f32 %v2083_v18, %v854_v46  ;;  %v2047_v18 = vld [vmem:[%s2882_s13 + $0xc0] sm:$0xf0]  ;;  %v1760_v41 = vld [vmem:[%s2882_s13 + $0x38] sm:$0xf]  ;;  %v1768_v46 = vld [vmem:[%s2882_s13 + $0x40] sm:$0xf] }
 0x35a   :  { %v1817_v20 = vor.u32 %v2047_v18, %v1816_v17  ;;  %v1761_v44 = vor.u32 %v2033_v42, %v1760_v41  ;;  %v1917_v17 = vor.u32 %v2070_v14, %v1916_v12  ;;  %v1921_v18 = vor.u32 %v2067_v15, %v1918_v16  ;;  %v1862_v41 = vld [vmem:[%s2882_s13 + $0x10c] sm:$0xf0] }
 0x35b   :  { %v860_v53 = vmul.f32 0.044715, %v855_v50  ;;  %v867_v55 = vmul.f32 0.7978846, %v865_v49  ;;  %v858_v0 = vmul.f32 0.5, %v855_v50  ;;  %1335 = vmatpush.bf16.msra.mxu0 %v1793_v36  ;;  %v1769_v49 = vor.u32 %v2034_v47, %v1768_v46 }
 0x35c   :  { %1320 = vmatpush.bf16.msra.mxu3 %v1817_v20  ;;  %v2071_v20 = vld [vmem:[%s2882_s13 + $0x180] sm:$0xf0]  ;;  %v1742_v36 = vld [vmem:[%s2882_s13 + $0x24] sm:$0xf0]  ;;  %v1861_v42 = vor.u32 %v2056_v39, %v1860_v37  ;;  %v1865_v43 = vor.u32 %v2053_v40, %v1862_v41  ;;  %v1781_v16 = vor.u32 %v2032_v7, %v1778_v8 }
 0x35d   :  { %v862_v56 = vmul.f32 %v860_v53, %v855_v50  ;;  %2101 = vtanh.f32 %v867_v55  ;;  %1350 = vmatpush.bf16.msrb.mxu1 %v1769_v49  ;;  %v1732_v53 = vld [vmem:[%s2882_s13] sm:$0xf]  ;;  %v2023_v55 = vld [vmem:[%s2882_s13 + $0x4] sm:$0xf]  ;;  %v1925_v21 = vor.u32 %v2071_v20, %v1924_v19  ;;  %v1745_v38 = vor.u32 %v2024_v35, %v1742_v36  ;;  %v1832_v49 = vld [vmem:[%s2882_s13 + $0xb8] sm:$0xf] }
 0x35e   :  { %v2028_v19 = vld [vmem:[%s2882_s13 + $0x28] sm:$0xf0]  ;;  %v2025_v20 = vld [vmem:[%s2882_s13 + $0x14] sm:$0xf] }
 0x35f   :  { %v864_v57 = vmul.f32 %v862_v56, %v855_v50  ;;  %1336 = vmatpush.bf16.msra.mxu0 %v1765_v48  ;;  %v1733_v56 = vor.u32 %v2026_v54, %v1732_v53  ;;  %v1834_v53 = vld [vmem:[%s2882_s13 + $0xd4] sm:$0xf0]  ;;  %v1840_v54 = vld [vmem:[%s2882_s13 + $0xc0] sm:$0xf] }
 0x360   :  { %1321 = vmatpush.bf16.msra.mxu3 %v1789_v32  ;;  %v2064_v32 = vld [vmem:[%s2882_s13 + $0x148] sm:$0xf0] }
 0x361   :  { %v866_v58 = vadd.f32 %v864_v57, %v855_v50  ;;  %v2052_v50 = vld [vmem:[%s2882_s13 + $0xec] sm:$0xf]  ;;  %v1734_v57 = vld [vmem:[%s2882_s13 + $0x1c] sm:$0xf0]  ;;  %v1897_v34 = vor.u32 %v2064_v32, %v1896_v31 }
 0x362   :  { %v1857_v52 = vor.u32 %v2052_v50, %v1854_v51  ;;  %v2049_v50 = vld [vmem:[%s2882_s13 + $0xd0] sm:$0xf0]  ;;  %v2046_v51 = vld [vmem:[%s2882_s13 + $0xbc] sm:$0xf] }
 0x363   :  { %v868_v59 = vmul.f32 0.7978846, %v866_v58  ;;  %v2102_v60 = vpop.eup %2101  ;;  %v1740_v58 = vld [vmem:[%s2882_s13 + $0x8] sm:$0xf] }
 0x364   :  { %v871_v61 = vadd.f32 1.0, %v2102_v60  ;;  %1322 = vmatpush.bf16.msra.mxu3 %v1761_v44  ;;  %1361 = vmatpush.bf16.msrb.mxu2 %v1857_v52  ;;  %v1737_v60 = vor.u32 %v2023_v55, %v1734_v57  ;;  %v1868_v44 = vld [vmem:[%s2882_s13 + $0xf8] sm:$0xf]  ;;  %v1833_v52 = vor.u32 %v2049_v50, %v1832_v49  ;;  %v2050_v55 = vld [vmem:[%s2882_s13 + $0xd8] sm:$0xf0]  ;;  %v1837_v57 = vor.u32 %v2046_v51, %v1834_v53 }
 0x365   :  { %2103 = vtanh.f32 %v868_v59  ;;  %v2027_v59 = vld [vmem:[%s2882_s13 + $0x20] sm:$0xf0]  ;;  %v1869_v46 = vor.u32 %v2057_v45, %v1868_v44 }
 0x366   :  { %v873_v2 = vmul.f32 %v871_v61, %v857_v63  ;;  %v1741_v61 = vor.u32 %v2027_v59, %v1740_v58  ;;  %v1826_v63 = vld [vmem:[%s2882_s13 + $0xcc] sm:$0xf0]  ;;  %1337 = vmatpush.bf16.msra.mxu0 %v1737_v60  ;;  %v1841_v58 = vor.u32 %v2050_v55, %v1840_v54  ;;  %v1804_v59 = vld [vmem:[%s2882_s13 + $0x80] sm:$0xf]  ;;  %v2042_v60 = vld [vmem:[%s2882_s13 + $0x98] sm:$0xf0] }
 0x368   :  { %1323 = vmatpush.bf16.msra.mxu3 %v1733_v56  ;;  %1351 = vmatpush.bf16.msrb.mxu1 %v1741_v61  ;;  %v2039_v61 = vld [vmem:[%s2882_s13 + $0x84] sm:$0xf] }
 0x36b   :  { %v2104_v62 = vpop.eup %2103 }
 0x36c   :  { %v872_v1 = vadd.f32 1.0, %v2104_v62  ;;  %v2045_v62 = vld [vmem:[%s2882_s13 + $0xb4] sm:$0xf]  ;;  %1400 = vmatpush.bf16.msra.mxu1 %v1953_v9 }
 0x36e   :  { %v874_v3 = vmul.f32 %v872_v1, %v858_v0  ;;  %v1944_v0 = vld [vmem:[%s2882_s13 + $0x198] sm:$0xf]  ;;  %v1829_v1 = vor.u32 %v2045_v62, %v1826_v63  ;;  %v1806_v62 = vld [vmem:[%s2882_s13 + $0x9c] sm:$0xf0] }
 0x370   :  { %v875_v4 = vpack.c.bf16 %v874_v3, %v873_v2  ;;  %v2077_v2 = vld [vmem:[%s2882_s13 + $0x1b0] sm:$0xf0]  ;;  %v2074_v3 = vld [vmem:[%s2882_s13 + $0x19c] sm:$0xf]  ;;  %1362 = vmatpush.bf16.msrb.mxu2 %v1829_v1  ;;  %1401 = vmatpush.bf16.msra.mxu1 %v1925_v21  ;;  %v1809_v1 = vor.u32 %v2039_v61, %v1806_v62  ;;  %v1750_v21 = vld [vmem:[%s2882_s13 + $0x2c] sm:$0xf0] }
 0x371   :  { %v1945_v5 = vor.u32 %v2077_v2, %v1944_v0  ;;  %v1805_v0 = vor.u32 %v2042_v60, %v1804_v59  ;;  %v1812_v2 = vld [vmem:[%s2882_s13 + $0x88] sm:$0xf]  ;;  %v1753_v28 = vor.u32 %v2025_v20, %v1750_v21 }
 0x372   :  { %1729 = vmatmul.msk.bf16.vlgmr.msra.gmra.mxu2 %vm726_vm1, %v875_v4  ;;  %v1946_v4 = vld [vmem:[%s2882_s13 + $0x1b4] sm:$0xf0] }
 0x373   :  { %v1949_v6 = vor.u32 %v2074_v3, %v1946_v4  ;;  %1372 = vmatpush.bf16.msrb.mxu3 %v1945_v5  ;;  %v2043_v3 = vld [vmem:[%s2882_s13 + $0xa0] sm:$0xf0]  ;;  %v1776_v4 = vld [vmem:[%s2882_s13 + $0x48] sm:$0xf] }
 0x374   :  { %1363 = vmatpush.bf16.msrb.mxu2 %v1801_v13  ;;  %1402 = vmatpush.bf16.msra.mxu1 %v1897_v34  ;;  %v1813_v5 = vor.u32 %v2043_v3, %v1812_v2 }
 0x375   :  { %1386 = vmatpush.bf16.msrb.mxu0 %v1949_v6  ;;  %v2035_v6 = vld [vmem:[%s2882_s13 + $0x60] sm:$0xf0] }
 0x376   :  { %v1777_v13 = vor.u32 %v2035_v6, %v1776_v4 }
 0x377   :  { %1373 = vmatpush.bf16.msrb.mxu3 %v1917_v17  ;;  %v1748_v17 = vld [vmem:[%s2882_s13 + $0x10] sm:$0xf] }
 0x378   :  { %1364 = vmatpush.bf16.msrb.mxu2 %v1773_v25  ;;  %1403 = vmatpush.bf16.msra.mxu1 %v1869_v46  ;;  %v1749_v27 = vor.u32 %v2028_v19, %v1748_v17 }
 0x379   :  { %1387 = vmatpush.bf16.msrb.mxu0 %v1921_v18  ;;  %v1785_v18 = vor.u32 %v2036_v11, %v1784_v10 }
 0x37b   :  { %1374 = vmatpush.bf16.msrb.mxu3 %v1889_v29  ;;  %v1757_v29 = vor.u32 %v2029_v24, %v1756_v23 }
 0x37c   :  { %1365 = vmatpush.bf16.msrb.mxu2 %v1745_v38  ;;  %1404 = vmatpush.bf16.msra.mxu1 %v1841_v58 }
 0x37d   :  { %1388 = vmatpush.bf16.msrb.mxu0 %v1893_v30 }
 0x37f   :  { %1375 = vmatpush.bf16.msrb.mxu3 %v1861_v42  ;;  %v2834_v42 = vld [vmem:[%s2883_s14] sm:$0x7f] }
 0x380   :  { %1405 = vmatpush.bf16.msra.mxu1 %v1813_v5  ;;  %v1016_v45 = vperm.slane %v2834_v42, 2  ;;  %v1017_v50 = vperm.slane %v2834_v42, 3  ;;  %v1020_v62 = vperm.slane %v2834_v42, 6  ;;  %v1019_v5 = vperm.slane %v2834_v42, 5 }
 0x381   :  { %1389 = vmatpush.bf16.msrb.mxu0 %v1865_v43  ;;  %v1015_v43 = vperm.slane %v2834_v42, 1  ;;  %v1018_v10 = vperm.slane %v2834_v42, 4 }
 0x383   :  { %1376 = vmatpush.bf16.msrb.mxu3 %v1833_v52 }
 0x384   :  { %1406 = vmatpush.bf16.msra.mxu1 %v1785_v18 }
 0x385   :  { %1390 = vmatpush.bf16.msrb.mxu0 %v1837_v57 }
 0x387   :  { %1377 = vmatpush.bf16.msrb.mxu3 %v1805_v0 }
 0x388   :  { %1407 = vmatpush.bf16.msra.mxu1 %v1757_v29 }
 0x389   :  { %1391 = vmatpush.bf16.msrb.mxu0 %v1809_v1 }
 0x38b   :  { %1378 = vmatpush.bf16.msrb.mxu3 %v1777_v13 }
 0x38d   :  { %1392 = vmatpush.bf16.msrb.mxu0 %v1781_v16 }
 0x38f   :  { %1379 = vmatpush.bf16.msrb.mxu3 %v1749_v27 }
 0x391   :  { %1393 = vmatpush.bf16.msrb.mxu0 %v1753_v28 }
 0x3f5   :  { %v924_v47 = vpop.f32.mrf.mxu2 }
 0x3f6   :  { %v2752_v48 = vadd.f32 %v2084_v33, %v924_v47 }
 0x3f8   :  { %v931_v56 = vmul.f32 0.044715, %v2752_v48  ;;  %v929_v36 = vmul.f32 0.5, %v2752_v48 }
 0x3fa   :  { %v933_v63 = vmul.f32 %v931_v56, %v2752_v48 }
 0x3fc   :  { %v935_v9 = vmul.f32 %v933_v63, %v2752_v48 }
 0x3fd   :  { %v926_v12 = vpop.f32.mrf.mxu2 }
 0x3fe   :  { %v937_v14 = vadd.f32 %v935_v9, %v2752_v48  ;;  %v927_v15 = vadd.f32 %v2084_v33, %v926_v12  ;;  %v1014_v48 = vperm.slane %v2834_v42, 0 }
 0x400   :  { %v932_v22 = vmul.f32 0.044715, %v927_v15  ;;  %v939_v25 = vmul.f32 0.7978846, %v937_v14  ;;  %v930_v37 = vmul.f32 0.5, %v927_v15 }
 0x402   :  { %v934_v26 = vmul.f32 %v932_v22, %v927_v15  ;;  %2105 = vtanh.f32 %v939_v25 }
 0x404   :  { %v936_v30 = vmul.f32 %v934_v26, %v927_v15 }
 0x406   :  { %v938_v31 = vadd.f32 %v936_v30, %v927_v15 }
 0x408   :  { %v940_v32 = vmul.f32 0.7978846, %v938_v31  ;;  %v2106_v33 = vpop.eup %2105 }
 0x409   :  { %v943_v34 = vadd.f32 1.0, %v2106_v33 }
 0x40a   :  { %2107 = vtanh.f32 %v940_v32 }
 0x40b   :  { %v945_v39 = vmul.f32 %v943_v34, %v929_v36 }
 0x410   :  { %v2108_v35 = vpop.eup %2107 }
 0x411   :  { %v944_v38 = vadd.f32 1.0, %v2108_v35 }
 0x413   :  { %v946_v40 = vmul.f32 %v944_v38, %v930_v37 }
 0x415   :  { %v947_v41 = vpack.c.bf16 %v946_v40, %v945_v39 }
 0x417   :  { %1324 = vmatmul.bf16.vlgmr.msra.gmra.mxu3 %v947_v41  ;;  %1338 = vmatmul.bf16.vlgmr.msra.gmra.mxu0 %v947_v41 }
 0x418   :  { %1352 = vmatmul.bf16.vlgmr.msrb.gmra.mxu1 %v947_v41  ;;  %1366 = vmatmul.bf16.vlgmr.msrb.gmra.mxu2 %v947_v41 }
 0x427   :  { %1380 = vmatmul.bf16.vlgmr.msrb.gmra.mxu3 %v947_v41  ;;  %1394 = vmatmul.bf16.vlgmr.msrb.gmra.mxu0 %v947_v41 }
 0x428   :  { %1408 = vmatmul.bf16.vlgmr.msra.gmra.mxu1 %v947_v41 }
 0x494   :  { %v1339_v44 = vpop.f32.mrf.mxu0 }
 0x495   :  { %v1353_v46 = vpop.f32.mrf.mxu1  ;;  %v1340_v47 = vadd.f32 %v1339_v44, %v1015_v43 }
 0x496   :  { %v1354_v49 = vadd.f32 %v1353_v46, %v1016_v45 }
 0x497   :  { %2109 = vtanh.f32 %v1340_v47 }
 0x498   :  { %2111 = vtanh.f32 %v1354_v49 }
 0x49a   :  { %v1325_v51 = vpop.f32.mrf.mxu3 }
 0x49b   :  { %v1326_v52 = vadd.f32 %v1325_v51, %v1014_v48  ;;  %v1367_v53 = vpop.f32.mrf.mxu2 }
 0x49c   :  { %v1368_v54 = vadd.f32 %v1367_v53, %v1017_v50  ;;  %v1341_v55 = vpop.f32.mrf.mxu0 }
 0x49d   :  { %2113 = vtanh.f32 %v1326_v52  ;;  %v1355_v56 = vpop.f32.mrf.mxu1  ;;  %v1342_v57 = vadd.f32 %v1341_v55, %v1015_v43  ;;  %v2110_v59 = vpop.eup %2109 }
 0x49e   :  { %2115 = vtanh.f32 %v1368_v54  ;;  %v1356_v58 = vadd.f32 %v1355_v56, %v1016_v45  ;;  %v2112_v60 = vpop.eup %2111 }
 0x49f   :  { %2117 = vtanh.f32 %v1342_v57 }
 0x4a0   :  { %2119 = vtanh.f32 %v1356_v58 }
 0x4a2   :  { %v1327_v61 = vpop.f32.mrf.mxu3 }
 0x4a3   :  { %v2114_v63 = vpop.eup %2113  ;;  %v1328_v0 = vadd.f32 %v1327_v61, %v1014_v48  ;;  %v1369_v1 = vpop.f32.mrf.mxu2 }
 0x4a4   :  { %v2116_v2 = vpop.eup %2115  ;;  %v1428_v3 = vpack.c.bf16 %v2110_v59, %v2114_v63  ;;  %v1370_v4 = vadd.f32 %v1369_v1, %v1017_v50  ;;  %v1395_v6 = vpop.f32.mrf.mxu0 }
 0x4a5   :  { %v1429_v7 = vpack.c.bf16 %v2116_v2, %v2112_v60  ;;  %2121 = vtanh.f32 %v1328_v0  ;;  %v1409_v8 = vpop.f32.mrf.mxu1  ;;  %v1396_v11 = vadd.f32 %v1395_v6, %v1019_v5  ;;  %v2118_v12 = vpop.eup %2117 }
 0x4a6   :  { %1436 = vst [vmem:[%s2884_s15] sm:$0xff] %v1428_v3  ;;  %2123 = vtanh.f32 %v1370_v4  ;;  %v1410_v9 = vadd.f32 %v1409_v8, %v1020_v62  ;;  %v2120_v13 = vpop.eup %2119 }
 0x4a7   :  { %1437 = vst [vmem:[%s2884_s15 + $0x8] sm:$0xff] %v1429_v7 }
 0x4a8   :  { %2125 = vtanh.f32 %v1410_v9 }
 0x4a9   :  { %2127 = vtanh.f32 %v1396_v11 }
 0x4aa   :  { %v1381_v14 = vpop.f32.mrf.mxu3 }
 0x4ab   :  { %v2122_v15 = vpop.eup %2121  ;;  %v1382_v16 = vadd.f32 %v1381_v14, %v1018_v10 }
 0x4ac   :  { %v2124_v17 = vpop.eup %2123  ;;  %v1432_v18 = vpack.c.bf16 %v2118_v12, %v2122_v15  ;;  %v1397_v20 = vpop.f32.mrf.mxu0 }
 0x4ad   :  { %v1433_v19 = vpack.c.bf16 %v2124_v17, %v2120_v13  ;;  %2129 = vtanh.f32 %v1382_v16  ;;  %v1411_v21 = vpop.f32.mrf.mxu1  ;;  %v1398_v25 = vadd.f32 %v1397_v20, %v1019_v5 }
 0x4ae   :  { %v2126_v22 = vpop.eup %2125  ;;  %1441 = vst [vmem:[%s2884_s15 + $0x1c] sm:$0xff] %v1432_v18  ;;  %v1412_v23 = vadd.f32 %v1411_v21, %v1020_v62 }
 0x4af   :  { %1442 = vst [vmem:[%s2884_s15 + $0x24] sm:$0xff] %v1433_v19  ;;  %v1431_v24 = vpack.c.bf16 %v2126_v22, %v2126_v22  ;;  %v2128_v26 = vpop.eup %2127 }
 0x4b0   :  { %2131 = vtanh.f32 %v1412_v23 }
 0x4b1   :  { %1440 = vst.msk [vmem:[%s2884_s15 + $0x18] sm:$0xf] %vm1439_vm3, %v1431_v24  ;;  %2133 = vtanh.f32 %v1398_v25 }
 0x4b2   :  { %v1383_v27 = vpop.f32.mrf.mxu3 }
 0x4b3   :  { %v2130_v28 = vpop.eup %2129  ;;  %v1384_v29 = vadd.f32 %v1383_v27, %v1018_v10 }
 0x4b4   :  { %v1430_v30 = vpack.c.bf16 %v2128_v26, %v2130_v28 }
 0x4b5   :  { %2135 = vtanh.f32 %v1384_v29 }
 0x4b6   :  { %v2132_v31 = vpop.eup %2131  ;;  %1438 = vst [vmem:[%s2884_s15 + $0x10] sm:$0xff] %v1430_v30 }
 0x4b7   :  { %v1435_v32 = vpack.c.bf16 %v2132_v31, %v2132_v31  ;;  %v2134_v33 = vpop.eup %2133 }
 0x4b9   :  { %1444 = vst.msk [vmem:[%s2884_s15 + $0x34] sm:$0xf] %vm1439_vm3, %v1435_v32 }
 0x4bb   :  { %v2136_v34 = vpop.eup %2135 }
 0x4bc   :  { %v1434_v35 = vpack.c.bf16 %v2134_v33, %v2136_v34 }
 0x4be   :  { %1443 = vst [vmem:[%s2884_s15 + $0x2c] sm:$0xff] %v1434_v35 }

</bundles_post_ra>
